<compile_context>
chip_gen: v7x
topology: tpu7x:2x2x1
jax: 0.10.0
libtpu: 0.0.40
codegen_flags: <defaults>
</compile_context>

<pallas_src>
import jax
import jax.numpy as jnp
from jax.experimental import pallas as pl
from jax.experimental.pallas import tpu as pltpu


def _gated_act_kernel(x_ref, o_ref):
    # x_ref block: (1, C, HW_T); o_ref block: (1, C//2, HW_T).
    ch = o_ref.shape[1]
    x = x_ref[:, :ch, :].astype(jnp.float32)   # activation half
    g = x_ref[:, ch:, :].astype(jnp.float32)   # gate half
    o_ref[...] = (jnp.tanh(x) * jax.nn.sigmoid(g)).astype(o_ref.dtype)


def _pick_hw_tile(hw: int, c: int, itemsize: int,
                  budget_bytes: int = 2 * 1024 * 1024) -> int:
    """Largest multiple-of-128 tile of the H*W axis that divides hw and keeps
    one (1, C, hw_t) input block under ~budget_bytes.  Falls back to the full
    extent when hw is not 128-aligned (correct; stores are masked)."""
    if hw % 128 != 0:
        # Lane axis below 128 is handled correctly, just with masked stores.
        return hw
    best = 128
    t = 128
    while t <= hw:
        if hw % t == 0 and c * t * itemsize <= budget_bytes:
            best = t
        t += 128
    return best


def gated_activation(x: jax.Array) -> jax.Array:
    """x: [B, C, H, W] (NCHW, matches PyTorch). Returns [B, C//2, H, W]."""
    b, c, h, w = x.shape
    assert c % 2 == 0, "GatedActivation requires an even number of channels"
    ch = c // 2
    hw = h * w

    # Contiguous reshape (free); the channel split happens inside the kernel,
    # so no extra HBM copies are materialized before the pallas_call.
    x3 = x.reshape(b, c, hw)

    hw_t = _pick_hw_tile(hw, c, jnp.dtype(x.dtype).itemsize)
    grid = (b, pl.cdiv(hw, hw_t))

    out3 = pl.pallas_call(
        _gated_act_kernel,
        out_shape=jax.ShapeDtypeStruct((b, ch, hw), x.dtype),
        grid=grid,
        in_specs=[pl.BlockSpec((1, c, hw_t), lambda bi, hi: (bi, 0, hi))],
        out_specs=pl.BlockSpec((1, ch, hw_t), lambda bi, hi: (bi, 0, hi)),
        compiler_params=pltpu.CompilerParams(
            dimension_semantics=("parallel", "parallel")),
    )(x3)

    return out3.reshape(b, ch, h, w)


if __name__ == "__main__":
    key = jax.random.PRNGKey(0)
    # Small NCHW input consistent with the module: B=2, C=4, H=W=16.
    x = jax.random.normal(key, (2, 4, 16, 16), dtype=jnp.float32)

    out = gated_activation(x)
    out = jax.block_until_ready(out)

    # Sanity check against a pure-JAX reference of the PyTorch forward.
    c = x.shape[1]
    ref = jnp.tanh(x[:, : c // 2]) * jax.nn.sigmoid(x[:, c // 2 :])
    assert out.shape == (2, 2, 16, 16)
    assert jnp.allclose(out, ref, atol=1e-6, rtol=1e-6)

    print("KERNEL_OK")
</pallas_src>

<mosaic_0001>
module attributes {stable_mosaic.version = 11 : i64} {
  func.func @_gated_act_kernel(%arg0: i32, %arg1: i32, %arg2: memref<1x4x256xf32, #tpu.memory_space<vmem>>, %arg3: memref<1x2x256xf32, #tpu.memory_space<vmem>>) attributes {dimension_semantics = [#tpu.dimension_semantics<parallel>, #tpu.dimension_semantics<parallel>], iteration_bounds = array<i64: 2, 1>, scalar_prefetch = 0 : i64, scratch_operands = 0 : i64, tpu.core_type = #tpu.core_type<tc>, window_params = [{transform_indices = @transform_0, window_bounds = array<i64: 1, 4, 256>}, {transform_indices = @transform_1, window_bounds = array<i64: 1, 2, 256>}]} {
    %c0 = arith.constant 0 : index
    %c0_0 = arith.constant 0 : index
    %c0_1 = arith.constant 0 : index
    %0 = vector.load %arg2[%c0, %c0_0, %c0_1] : memref<1x4x256xf32, #tpu.memory_space<vmem>>, vector<1x2x256xf32>
    %c0_2 = arith.constant 0 : index
    %c2 = arith.constant 2 : index
    %c0_3 = arith.constant 0 : index
    %1 = vector.load %arg2[%c0_2, %c2, %c0_3] : memref<1x4x256xf32, #tpu.memory_space<vmem>>, vector<1x2x256xf32>
    %2 = math.tanh %0 : vector<1x2x256xf32>
    %3 = arith.negf %1 : vector<1x2x256xf32>
    %4 = math.exp %3 : vector<1x2x256xf32>
    %cst = arith.constant 1.000000e+00 : f32
    %5 = vector.broadcast %cst : f32 to vector<1x2x256xf32>
    %6 = arith.addf %5, %4 : vector<1x2x256xf32>
    %7 = arith.divf %5, %6 : vector<1x2x256xf32>
    %8 = arith.mulf %2, %7 : vector<1x2x256xf32>
    %c0_4 = arith.constant 0 : index
    %c0_5 = arith.constant 0 : index
    %c0_6 = arith.constant 0 : index
    %9 = vector.load %arg3[%c0_4, %c0_5, %c0_6] : memref<1x2x256xf32, #tpu.memory_space<vmem>>, vector<1x2x256xf32>
    tpu.vector_store %arg3[%c0_4, %c0_5, %c0_6], %8 {strides = array<i32>} : memref<1x2x256xf32, #tpu.memory_space<vmem>>, vector<1x2x256xf32>,
    return
  }
  func.func @transform_0(%arg0: i32, %arg1: i32) -> (i32, i32, i32) {
    %c0_i32 = arith.constant 0 : i32
    %c0_i32_0 = arith.constant 0 : i32
    return %arg0, %c0_i32, %arg1 : i32, i32, i32
  }
  func.func @transform_1(%arg0: i32, %arg1: i32) -> (i32, i32, i32) {
    %c0_i32 = arith.constant 0 : i32
    %c0_i32_0 = arith.constant 0 : i32
    return %arg0, %c0_i32, %arg1 : i32, i32, i32
  }
}

</mosaic_0001>

<bundles_post_ra>
// kernel: tpu_custom_call.1
= control target key start
LH: loop header
LB: loop body
LE: loop exit
PB: predicated region body
PF: predicated region fallthrough
CT: control target
= control target key end

     0   :  { %6 = vsyncpa [#allocation3], 0  ;;  %s665_s0 = inlined_call_operand.hbm [shape: f32[2,4,256], index: 0, kind: input, shape index: {}]   ;;  %s666_s1 = inlined_call_operand.hbm [shape: f32[2,2,256], index: 1, kind: output, shape index: {}]  }
   0x1   :  { %8 = vsyncpa [#allocation3 + $0x1], 0 }
   0x2   :  { %9 = vsyncpa [#allocation4], 0 }
   0x3   :  { %11 = vsyncpa [#allocation4 + $0x1], 0  ;;  %s492_s6 = smov 0   ;;  %s494_s7 = smov 0  }
   0x4   :  { %s496_s8 = smov 0   ;;  %s498_s9 = smov 0  }
   0x5   :  { %s500_s10 = smov 0   ;;  %s502_s11 = smov 0  }
   0x6 LB: > { %s278_s12 = sadd.s32 4294967295, %s478_s11   ;;  %s279_s13 = sadd.s32 4294967294, %s478_s11   ;;  %s478_s11 = sphi %s502_s11, %s17_s11   ;;  %s474_s10 = sphi %s500_s10, %s682_s10   ;;  %s470_s9 = sphi %s498_s9, %s681_s9   ;;  %s466_s8 = sphi %s496_s8, %s680_s8   ;;  %s462_s7 = sphi %s494_s7, %s679_s7   ;;  %s458_s6 = sphi %s492_s6, %s678_s6  }
   0x7   : > { %s29_s14 = sadd.s32 1, %s474_s10  ;;  %s38_s15 = sadd.s32 1, %s466_s8 }
   0x8   : > { %p31_p0 = scmp.ge.s32.totalorder %s29_s14, 2  ;;  %p45_p1 = scmp.ne.s32.totalorder %s466_s8, %s462_s7 }
   0x9   : > { %p46_p2 = scmp.eq.s32.totalorder %s478_s11, 0  ;;  %p51_p3 = scmp.ne.s32.totalorder %s462_s7, %s458_s6 }
   0xa   : > { %s684_s14 = smov (%p31_p0, %s29_s14), 0  ;;  %p52_p5 = scmp.eq.s32.totalorder %s278_s12, 0 }
   0xb   : > { %p533_p4 = por %p46_p2, %p45_p1  ;;  %s33_s17 = ssub.s32 %s474_s10, %s684_s14 }
   0xc   : > { %p77_p6 = scmp.eq.s32.totalorder %s278_s12, 1  ;;  %p36_p7 = scmp.eq.s32.totalorder %s33_s17, 0 }
   0xd   : > { %p539_p8 = por %p52_p5, %p51_p3  ;;  %p83_p10 = scmp.eq.s32.totalorder %s279_s13, 1 }
   0xe   : > { %p543_p9 = por %p77_p6, %p45_p1  ;;  %p310_p13 = scmp.lt.s32.totalorder %s478_s11, 2 }
   0xf   : > { %s548_s20 = scalar_select %p36_p7, %s466_s8, %s38_s15  }
  0x10   : > { %s670_s19 = scalar_select %p543_p9, 1, 0 }
  0x11   : > { %p550_p11 = por %p83_p10, %p51_p3  ;;  %s103_s22 = sand.u32 1, %s466_s8  }
  0x12   : > { %s282_s23 = sshll.u32 %s103_s22, 3  ;;  %s296_s24 = sshll.u32 %s474_s10, 7 }
  0x13   : > { %s671_s21 = scalar_select %p550_p11, 1, 0 }
  0x14   : > { %s561_s27 = scalar_lea.hbm %s665_s0, %s296_s24  ;;  %s107_s28 = scalar_lea.vmem [#allocation2], %s282_s23 }
  0x15   : > { %s117_s29 = sshll.u32 %s107_s28, 4  ;;  %p567_p0 = pnand %p310_p13, %p533_p4  ;;  %s563_s29 = int_to_ptr.vmem [resolvable:$true] %s117_s29 }
  0x16   : > { %s104_s2 = scalar_lea.sflag [#allocation3], %s103_s22  ;;  %s366_s3 = scalar_lea.hbm %s561_s27, 128 }
  0x17   : > { %p367_p3 = scmp.ne.s32.totalorder %s561_s27, %s366_s3  ;;  %p368_p5 = pneg %p567_p0 }
  0x18   : > { %s371_s12 = scalar_lea.hbm %s665_s0, 256  ;;  %p372_p4 = scmp.lt.u32.totalorder %s561_s27, %s665_s0 }
  0x19   : > { %p369_p6 = pnand %p368_p5, %p367_p3  ;;  %p373_p10 = scmp.lt.u32.totalorder %s371_s12, %s366_s3 }
  0x1a   : > { %p375_p12 = scmp.lt.u32.totalorder %s366_s3, %s561_s27 }
  0x1b   : > { %p370_p7 = pneg %p369_p6  ;;  %p374_p13 = por %p373_p10, %p372_p4 }
  0x1d   : > { %p376_p1 = por %p375_p12, %p374_p13 }
  0x1f   : > { %p377_p2 = pnand %p376_p1, %p370_p7 }
  0x21   : > { %380 = shalt.err (!%p377_p2)
}
  0x22   : > { %s381_s16 = scalar_lea.vmem %s563_s29, 128  ;;  %s480_s17 = smov [#allocation2]  }
  0x23   : > { %p382_p3 = scmp.ne.s32.totalorder %s563_s29, %s381_s16  ;;  %s386_s22 = sshll.u32 %s480_s17, 4  ;;  %s387_s22 = int_to_ptr.vmem [resolvable:$false] %s386_s22 }
  0x24   : > { %s388_s23 = scalar_lea.vmem %s387_s22, 256  ;;  %p389_p9 = scmp.lt.s32.totalorder %s563_s29, %s387_s22 }
  0x25   : > { %p384_p6 = pnand %p382_p3, %p368_p5  ;;  %p390_p4 = scmp.lt.s32.totalorder %s388_s23, %s381_s16 }
  0x27   : > { %p385_p11 = pneg %p384_p6  ;;  %p391_p10 = por %p390_p4, %p389_p9 }
  0x29   : > { %p392_p12 = pnand %p391_p10, %p385_p11 }
  0x2b   : > { %395 = shalt.err (!%p392_p12)
}
  0x2c   : > { %305 = dma.hbm_to_vmem [thread:$0]  (!%p567_p0), %s561_s27, 128, %s563_s29, %s104_s2  }
  0x2d   : > { %p673_p1 = scmp.lt.s32.totalorder %s478_s11, 3  ;;  %p674_p2 = scmp.ge.s32.totalorder %s478_s11, 1 }
  0x2f   : > { %p123_p5 = pnand %p674_p2, %p673_p1 }
  0x30   : > { %s603_s24 = sand.u32 (!%p123_p5), 1, %s462_s7  }
  0x31   : > { %126 = sbr.rel (%p123_p5) target bundleno = 102 (0x66), region = 24  ;;  %s286_s25 = sshll.u32 (!%p123_p5), %s603_s24, 3 }
  0x32   : > { %s129_s26 = scalar_lea.sflag (!%p123_p5), [#allocation3], %s603_s24  ;;  %s132_s28 = scalar_lea.vmem (!%p123_p5), [#allocation2], %s286_s25 }
  0x38   : > { %449 = dma.done.wait (%p539_p8), %s129_s26, 128  }
  0x39   : > { %451 = vsyncadd (%p539_p8), %s129_s26, 4294967168  ;;  %v154_v0 = vld [vmem:[%s132_s28] sm:$0xcc]  ;;  %v153_v2 = vld [vmem:[%s132_s28] sm:$0x33]  ;;  %s287_s27 = sshll.u32 %s603_s24, 2 }
  0x3a   : > { %v288_v1 = vmul.f32 -1.442695, %v154_v0  ;;  %s150_s29 = scalar_lea.vmem [#allocation5], %s287_s27  ;;  %s297_s2 = sshll.u32 %s470_s9, 6 }
  0x3b   : > { %s194_s30 = sshll.u32 %s150_s29, 4  ;;  %s618_s4 = scalar_lea.hbm %s666_s1, %s297_s2  ;;  %s613_s30 = int_to_ptr.vmem [resolvable:$true] %s194_s30 }
  0x3c   : > { %360 = vpow2.f32 %v288_v1  ;;  %s178_s5 = scalar_lea.sflag [#allocation4], %s603_s24  ;;  %s396_s12 = scalar_lea.vmem %s613_s30, 64 }
  0x3d   : > { %362 = vtanh.f32 %v153_v2  ;;  %p397_p8 = scmp.ne.s32.totalorder %s613_s30, %s396_s12  ;;  %p675_p9 = scmp.ne.s32.totalorder %s670_s19, 0 }
  0x3e   : > { %s481_s9 = smov [#allocation5]  }
  0x3f   : > { %p398_p11 = pnand %p397_p8, %p675_p9  ;;  %s400_s13 = sshll.u32 %s481_s9, 4  ;;  %s401_s13 = int_to_ptr.vmem [resolvable:$false] %s400_s13 }
  0x40   : > { %s402_s15 = scalar_lea.vmem %s401_s13, 128  ;;  %p403_p7 = scmp.lt.s32.totalorder %s613_s30, %s401_s13 }
  0x41   : > { %p399_p0 = pneg %p398_p11  ;;  %p404_p13 = scmp.lt.s32.totalorder %s402_s15, %s396_s12 }
  0x43   : > { %p405_p3 = por %p404_p13, %p403_p7 }
  0x45   : > { %p406_p6 = pnand %p405_p3, %p399_p0 }
  0x46   : > { %v361_v3 = vpop.eup %360 }
  0x47   : > { %v159_v4 = vadd.f32 1.0, %v361_v3  ;;  %v363_v5 = vpop.eup %362 }
  0x49   : > { %364 = vrcp.f32 %v159_v4 }
  0x53   : > { %v365_v6 = vpop.eup %364 }
  0x54   : > { %v289_v7 = vrot.slane %v365_v6, 10 }
  0x56   : > { %v166_v8 = vmul.f32 %v363_v5, %v289_v7 }
  0x58   : > { %290 = vst.sshfl [vmem:[%s150_s29] sm:$0x33 pattern:$0x76325410] %v166_v8 }
  0x59   : > { %409 = shalt.err (!%p406_p6)
}
  0x5a   : > { %s410_s16 = scalar_lea.hbm %s618_s4, 64  ;;  %s414_s23 = scalar_lea.hbm %s666_s1, 128 }
  0x5b   : > { %p411_p4 = scmp.ne.s32.totalorder %s618_s4, %s410_s16  ;;  %p415_p1 = scmp.lt.u32.totalorder %s618_s4, %s666_s1 }
  0x5c   : > { %p416_p2 = scmp.lt.u32.totalorder %s414_s23, %s410_s16  ;;  %p418_p8 = scmp.lt.u32.totalorder %s410_s16, %s618_s4 }
  0x5d   : > { %p412_p10 = pnand %p411_p4, %p675_p9 }
  0x5e   : > { %p417_p5 = por %p416_p2, %p415_p1 }
  0x5f   : > { %p413_p12 = pneg %p412_p10 }
  0x60   : > { %p419_p11 = por %p418_p8, %p417_p5 }
  0x62   : > { %p420_p0 = pnand %p419_p11, %p413_p12 }
  0x64   : > { %423 = shalt.err (!%p420_p0)
}
  0x65   : > { %300 = dma.vmem_to_hbm [thread:$0]  (%p675_p9), %s613_s30, 64, %s618_s4, %s178_s5  }
  0x66 PF: > { %s206_s26 = sand.u32 1, %s458_s6   ;;  %p676_p7 = scmp.ne.s32.totalorder %s671_s21, 0 }
  0x67   : > { %p677_p13 = scmp.ge.s32.totalorder %s478_s11, 2  ;;  %s207_s28 = scalar_lea.sflag [#allocation4], %s206_s26 }
  0x69   : > { %p307_p3 = pnand %p677_p13, %p676_p7 }
  0x6b   : > { %453 = dma.done.wait (!%p307_p3), %s207_s28, 64  }
  0x6c   : > { %455 = vsyncadd (!%p307_p3), %s207_s28, 4294967232  ;;  %s17_s11 = sadd.s32 1, %s478_s11   ;;  %s678_s6 = smov %s462_s7 }
  0x6d   : > { %p14_p6 = scmp.ge.s32.totalorder %s17_s11, 4   ;;  %s679_s7 = smov %s466_s8 }
  0x6e   : > { %s680_s8 = smov %s548_s20  ;;  %s681_s9 = smov %s474_s10 }
  0x6f   : > { %s682_s10 = smov %s684_s14  ;;  %16 = sbr.rel (!%p14_p6) target bundleno = 6 (0x6), region = 69 }
  0x76   :  { %212 = vsyncpa [#allocation3], 1 }
  0x77   :  { %214 = vsyncpa [#allocation3 + $0x1], 1 }
  0x78   :  { %215 = vsyncpa [#allocation4], 1 }
  0x79   :  { %217 = vsyncpa [#allocation4 + $0x1], 1 }

</bundles_post_ra>
